<compile_context>
chip_gen: v5e
topology: v5e:2x2
jax: 0.10.0
libtpu: 0.0.40
codegen_flags: <defaults>
</compile_context>

<pallas_src>
import functools
import math

import jax
import jax.numpy as jnp
from jax.experimental import pallas as pl
from jax.experimental.pallas import tpu as pltpu

LANES = 128
SUBLANES = 8
CHUNK_ROWS = 256            # strip-mine granularity inside a block
DEFAULT_BLOCK_ROWS = 8192   # 8192 x 128 f32 = 4 MiB per input tile
VMEM_LIMIT_BYTES = 48 << 20


def _round_up(a, b):
    return ((a + b - 1) // b) * b


def _ce_loss_kernel(x_ref, y_ref, o_ref, *, block_rows, chunk_rows, total_rows):
    i = pl.program_id(0)
    last = pl.num_programs(0) - 1
    n_chunks = block_rows // chunk_rows

    def partial_sum(masked):
        def body(c, acc):
            r0 = pl.multiple_of(c * chunk_rows, chunk_rows)
            xv = x_ref[pl.ds(r0, chunk_rows), :].astype(jnp.float32)
            yv = y_ref[pl.ds(r0, chunk_rows), :].astype(jnp.float32)
            loss = yv * jnp.log(xv + jnp.float32(1e-6))
            if masked:
                # Rows past the real array hold garbage (partial last block);
                # select (not multiply) so NaN/-inf there is discarded.
                row_ids = (
                    i * block_rows
                    + c * chunk_rows
                    + jax.lax.broadcasted_iota(jnp.int32, (chunk_rows, LANES), 0)
                )
                loss = jnp.where(row_ids < total_rows, loss, jnp.float32(0.0))
            # (chunk, 128) -> (chunk//8, 8, 128) -> sum over leading axis:
            # pure vreg adds, lane/sublane layout untouched.
            return acc + jnp.sum(
                loss.reshape(chunk_rows // SUBLANES, SUBLANES, LANES), axis=0
            )

        return jax.lax.fori_loop(
            0, n_chunks, body, jnp.zeros((SUBLANES, LANES), jnp.float32)
        )

    @pl.when(i != last)
    def _():
        o_ref[...] = partial_sum(masked=False)

    @pl.when(i == last)
    def _():
        o_ref[...] = partial_sum(masked=True)


def ce_loss(x, y, index=0, *, block_rows=DEFAULT_BLOCK_ROWS,
            min_pallas_elems=1 << 17):
    """Pallas equivalent of CE_Loss(index).forward(x, y). Returns scalar f32."""
    x = jnp.asarray(x)
    y = jnp.asarray(y)
    if index < 0:
        index += x.shape[0]
    assert x.shape[1:] == y.shape[1:], (x.shape, y.shape)
    n = math.prod(x.shape[1:])

    # Tiny inputs: XLA's fused elementwise+reduce beats kernel launch cost.
    if n < min_pallas_elems:
        xs = x[index].astype(jnp.float32)
        ys = y[index].astype(jnp.float32)
        return -jnp.mean(ys * jnp.log(xs + jnp.float32(1e-6)))

    if n % LANES == 0:
        # Common case: zero wrapper-side HBM copies.  Reshape of the full
        # contiguous tensor is layout-preserving; `index` is picked in the
        # index_map (squeezed leading dim).
        rows = n // LANES
        x3 = x.reshape(x.shape[0], rows, LANES)
        y3 = y.reshape(y.shape[0], rows, LANES)
        idx = index
    else:
        # Rare: slice + tail-only pad to a multiple of 128 lanes (pad
        # contributes exactly 0: y=0 -> 0 * log(1 + 1e-6) == 0).
        pad = LANES - n % LANES
        xf = jnp.pad(x[index].reshape(-1), (0, pad), constant_values=1)
        yf = jnp.pad(y[index].reshape(-1), (0, pad), constant_values=0)
        rows = (n + pad) // LANES
        x3 = xf.reshape(1, rows, LANES)
        y3 = yf.reshape(1, rows, LANES)
        idx = 0

    # Row-tile granularity per dtype packing: (8|16|32, 128).
    itemsize = jnp.dtype(x3.dtype).itemsize
    sub = {4: SUBLANES, 2: 16, 1: 32}.get(itemsize, SUBLANES)

    # Tile rows: as large as block_rows, but keep >= 2 blocks so the
    # "parallel" grid shards across both TensorCores on v7x; always a multiple
    # of `sub`, and of the strip size when large.
    br = min(block_rows, _round_up(pl.cdiv(rows, 2), sub))
    br = _round_up(max(br, 1), sub)
    if br >= CHUNK_ROWS:
        br = _round_up(br, CHUNK_ROWS)
        chunk = CHUNK_ROWS
    else:
        chunk = br
    num_blocks = pl.cdiv(rows, br)

    kernel = functools.partial(
        _ce_loss_kernel, block_rows=br, chunk_rows=chunk, total_rows=rows
    )

    in_spec = pl.BlockSpec((None, br, LANES), lambda i: (idx, i, 0))
    partials = pl.pallas_call(
        kernel,
        out_shape=jax.ShapeDtypeStruct((num_blocks * SUBLANES, LANES), jnp.float32),
        grid_spec=pltpu.PrefetchScalarGridSpec(
            num_scalar_prefetch=0,
            grid=(num_blocks,),
            in_specs=[in_spec, in_spec],
            out_specs=pl.BlockSpec((SUBLANES, LANES), lambda i: (i, 0)),
        ),
        compiler_params=pltpu.CompilerParams(
            dimension_semantics=("parallel",),
            vmem_limit_bytes=VMEM_LIMIT_BYTES,
        ),
    )(x3, y3)

    # Tiny final reduction (num_blocks * 1024 elements) + mean + negate.
    return -jnp.sum(partials, dtype=jnp.float32) / jnp.float32(n)


if __name__ == "__main__":
    key = jax.random.PRNGKey(0)
    kx, ky = jax.random.split(key)
    # x: probabilities-like (strictly positive), y: targets. Shape [2, 4, 16, 16];
    # CE_Loss(index=0) uses the slice [4, 16, 16] (n = 1024 elements).
    x = jax.random.uniform(kx, (2, 4, 16, 16), jnp.float32, minval=0.05, maxval=1.0)
    y = jax.random.uniform(ky, (2, 4, 16, 16), jnp.float32)

    ref = -jnp.mean(y[0] * jnp.log(x[0] + 1e-6))

    # Default path for this tiny input is the pure-JAX fast path.
    fast = jax.block_until_ready(ce_loss(x, y, index=0))
    assert jnp.allclose(fast, ref, rtol=1e-5, atol=1e-6), (fast, ref)

    # Force the Pallas path so the kernel itself compiles and runs on TPU.
    loss = jax.block_until_ready(ce_loss(x, y, index=0, min_pallas_elems=0))
    assert jnp.allclose(loss, ref, rtol=1e-5, atol=1e-6), (loss, ref)

    print("KERNEL_OK")
</pallas_src>

<mosaic_0001>
module attributes {stable_mosaic.version = 11 : i64} {
  func.func @_ce_loss_kernel(%arg0: i32, %arg1: memref<1x8x128xf32, #tpu.memory_space<vmem>>, %arg2: memref<1x8x128xf32, #tpu.memory_space<vmem>>, %arg3: memref<8x128xf32, #tpu.memory_space<vmem>>) attributes {dimension_semantics = [#tpu.dimension_semantics<parallel>], iteration_bounds = array<i64: 1>, scalar_prefetch = 0 : i64, scratch_operands = 0 : i64, tpu.core_type = #tpu.core_type<tc>, window_params = [{transform_indices = @transform_0, window_bounds = array<i64: 1, 8, 128>}, {transform_indices = @transform_1, window_bounds = array<i64: 1, 8, 128>}, {transform_indices = @transform_2, window_bounds = array<i64: 8, 128>}]} {
    %c0_i32 = arith.constant 0 : i32
    %0 = arith.cmpi ne, %arg0, %c0_i32 : i32
    %1 = arith.extui %0 : i1 to i32
    %c0_i32_0 = arith.constant 0 : i32
    %2 = arith.cmpi ne, %1, %c0_i32_0 : i32
    scf.if %2 {
      %cst = arith.constant 0.000000e+00 : f32
      %6 = vector.broadcast %cst : f32 to vector<8x128xf32>
      %c0_i32_3 = arith.constant 0 : i32
      %c8_i32 = arith.constant 8 : i32
      %7 = arith.muli %c0_i32_3, %c8_i32 : i32
      %8 = tpu.assume_multiple %7, 8 : i32
      %c0 = arith.constant 0 : index
      %9 = arith.index_cast %8 : i32 to index
      %c0_4 = arith.constant 0 : index
      %10 = vector.load %arg1[%c0, %9, %c0_4] : memref<1x8x128xf32, #tpu.memory_space<vmem>>, vector<1x8x128xf32>
      %11 = vector.shape_cast %10 : vector<1x8x128xf32> to vector<8x128xf32>
      %c0_5 = arith.constant 0 : index
      %12 = arith.index_cast %8 : i32 to index
      %c0_6 = arith.constant 0 : index
      %13 = vector.load %arg2[%c0_5, %12, %c0_6] : memref<1x8x128xf32, #tpu.memory_space<vmem>>, vector<1x8x128xf32>
      %14 = vector.shape_cast %13 : vector<1x8x128xf32> to vector<8x128xf32>
      %cst_7 = arith.constant 9.99999997E-7 : f32
      %15 = vector.broadcast %cst_7 : f32 to vector<8x128xf32>
      %16 = arith.addf %11, %15 : vector<8x128xf32>
      %17 = math.log %16 : vector<8x128xf32>
      %18 = arith.mulf %14, %17 : vector<8x128xf32>
      %19 = vector.shape_cast %18 : vector<8x128xf32> to vector<1x8x128xf32>
      %cst_8 = arith.constant dense<0.000000e+00> : vector<8x128xf32>
      %20 = vector.multi_reduction <add>, %19, %cst_8 [0] : vector<1x8x128xf32> to vector<8x128xf32>
      %21 = arith.addf %6, %20 : vector<8x128xf32>
      %c1_i32 = arith.constant 1 : i32
      %c0_9 = arith.constant 0 : index
      %c0_10 = arith.constant 0 : index
      %22 = vector.load %arg3[%c0_9, %c0_10] : memref<8x128xf32, #tpu.memory_space<vmem>>, vector<8x128xf32>
      tpu.vector_store %arg3[%c0_9, %c0_10], %21 {strides = array<i32>} : memref<8x128xf32, #tpu.memory_space<vmem>>, vector<8x128xf32>,
    } else {
    }
    %c0_i32_1 = arith.constant 0 : i32
    %3 = arith.cmpi eq, %arg0, %c0_i32_1 : i32
    %4 = arith.extui %3 : i1 to i32
    %c0_i32_2 = arith.constant 0 : i32
    %5 = arith.cmpi ne, %4, %c0_i32_2 : i32
    scf.if %5 {
      %cst = arith.constant 0.000000e+00 : f32
      %6 = vector.broadcast %cst : f32 to vector<8x128xf32>
      %c0_i32_3 = arith.constant 0 : i32
      %c8_i32 = arith.constant 8 : i32
      %7 = arith.muli %c0_i32_3, %c8_i32 : i32
      %8 = tpu.assume_multiple %7, 8 : i32
      %c0 = arith.constant 0 : index
      %9 = arith.index_cast %8 : i32 to index
      %c0_4 = arith.constant 0 : index
      %10 = vector.load %arg1[%c0, %9, %c0_4] : memref<1x8x128xf32, #tpu.memory_space<vmem>>, vector<1x8x128xf32>
      %11 = vector.shape_cast %10 : vector<1x8x128xf32> to vector<8x128xf32>
      %c0_5 = arith.constant 0 : index
      %12 = arith.index_cast %8 : i32 to index
      %c0_6 = arith.constant 0 : index
      %13 = vector.load %arg2[%c0_5, %12, %c0_6] : memref<1x8x128xf32, #tpu.memory_space<vmem>>, vector<1x8x128xf32>
      %14 = vector.shape_cast %13 : vector<1x8x128xf32> to vector<8x128xf32>
      %cst_7 = arith.constant 9.99999997E-7 : f32
      %15 = vector.broadcast %cst_7 : f32 to vector<8x128xf32>
      %16 = arith.addf %11, %15 : vector<8x128xf32>
      %17 = math.log %16 : vector<8x128xf32>
      %18 = arith.mulf %14, %17 : vector<8x128xf32>
      %c8_i32_8 = arith.constant 8 : i32
      %19 = arith.muli %arg0, %c8_i32_8 : i32
      %c8_i32_9 = arith.constant 8 : i32
      %20 = arith.muli %c0_i32_3, %c8_i32_9 : i32
      %21 = arith.addi %19, %20 : i32
      %22 = tpu.iota {dimensions = array<i32: 0>} : vector<8x128xi32>
      %23 = vector.broadcast %21 : i32 to vector<8x128xi32>
      %24 = arith.addi %23, %22 : vector<8x128xi32>
      %c8_i32_10 = arith.constant 8 : i32
      %25 = vector.broadcast %c8_i32_10 : i32 to vector<8x128xi32>
      %26 = arith.cmpi slt, %24, %25 : vector<8x128xi32>
      %cst_11 = arith.constant 0.000000e+00 : f32
      %27 = vector.broadcast %cst_11 : f32 to vector<8x128xf32>
      %28 = arith.select %26, %18, %27 : vector<8x128xi1>, vector<8x128xf32>
      %29 = vector.shape_cast %28 : vector<8x128xf32> to vector<1x8x128xf32>
      %cst_12 = arith.constant dense<0.000000e+00> : vector<8x128xf32>
      %30 = vector.multi_reduction <add>, %29, %cst_12 [0] : vector<1x8x128xf32> to vector<8x128xf32>
      %31 = arith.addf %6, %30 : vector<8x128xf32>
      %c1_i32 = arith.constant 1 : i32
      %c0_13 = arith.constant 0 : index
      %c0_14 = arith.constant 0 : index
      %32 = vector.load %arg3[%c0_13, %c0_14] : memref<8x128xf32, #tpu.memory_space<vmem>>, vector<8x128xf32>
      tpu.vector_store %arg3[%c0_13, %c0_14], %31 {strides = array<i32>} : memref<8x128xf32, #tpu.memory_space<vmem>>, vector<8x128xf32>,
    } else {
    }
    return
  }
  func.func @transform_0(%arg0: i32) -> (i32, i32, i32) {
    %c0_i32 = arith.constant 0 : i32
    %c0_i32_0 = arith.constant 0 : i32
    %c0_i32_1 = arith.constant 0 : i32
    return %c0_i32, %arg0, %c0_i32_0 : i32, i32, i32
  }
  func.func @transform_1(%arg0: i32) -> (i32, i32, i32) {
    %c0_i32 = arith.constant 0 : i32
    %c0_i32_0 = arith.constant 0 : i32
    %c0_i32_1 = arith.constant 0 : i32
    return %c0_i32, %arg0, %c0_i32_0 : i32, i32, i32
  }
  func.func @transform_2(%arg0: i32) -> (i32, i32) {
    %c0_i32 = arith.constant 0 : i32
    %c0_i32_0 = arith.constant 0 : i32
    return %arg0, %c0_i32 : i32, i32
  }
}

</mosaic_0001>

<bundles_post_ra>
// kernel: tpu_custom_call.1
= control target key start
LH: loop header
LB: loop body
LE: loop exit
PB: predicated region body
PF: predicated region fallthrough
CT: control target
= control target key end

     0   :  { %7 = vsyncpa [#allocation3], 0  ;;  %s201_s0 = inlined_call_operand.hbm [shape: f32[2,8,128], index: 0, kind: input, shape index: {}]   ;;  %s202_s1 = inlined_call_operand.hbm [shape: f32[2,8,128], index: 1, kind: input, shape index: {}]   ;;  %s203_s2 = inlined_call_operand.hbm [shape: f32[8,128], index: 2, kind: output, shape index: {}]  }
   0x1   :  { %8 = vsyncpa [#allocation6], 0 }
   0x2   :  { %9 = vsyncpa [#allocation4], 0  ;;  %s15_s11 = sshll.u32 %s201_s0, 4  ;;  %s174_s12 = smov [#allocation2]   ;;  %s16_s11 = int_to_ptr.hbm [resolvable:$true] %s15_s11 }
   0x3   :  { %s17_s13 = sshll.u32 %s174_s12, 4  ;;  %s26_s16 = sshll.u32 %s202_s1, 4  ;;  %s18_s13 = int_to_ptr.vmem [resolvable:$true] %s17_s13  ;;  %s27_s16 = int_to_ptr.hbm [resolvable:$true] %s26_s16 }
   0x4   :  { %20 = dma.hbm_to_vmem [thread:$0]  %s16_s11, 128, %s18_s13, [#allocation3]  }
   0x5   :  { %s175_s17 = smov [#allocation5]  }
   0x6   :  { %s28_s18 = sshll.u32 %s175_s17, 4  ;;  %s29_s18 = int_to_ptr.vmem [resolvable:$true] %s28_s18 }
   0x7   :  { %31 = dma.hbm_to_vmem [thread:$0]  %s27_s16, 128, %s29_s18, [#allocation6]  }
   0x8   :  { %168 = dma.done.wait [#allocation3], 128  }
   0x9   :  { %169 = vsyncadd [#allocation3], 4294967168 }
   0xa   :  { %170 = dma.done.wait [#allocation6], 128  }
   0xb   :  { %171 = vsyncadd [#allocation6], 4294967168  ;;  %v57_v0 = vld [vmem:[#allocation2] sm:$0xff]  ;;  %v58_v3 = vld [vmem:[#allocation5] sm:$0xff]  ;;  %s176_s0 = smov [#allocation7]   ;;  %s80_s1 = sshll.u32 %s203_s2, 4  ;;  %s81_s1 = int_to_ptr.hbm [resolvable:$true] %s80_s1 }
   0xc   :  { %v59_v1 = vadd.f32 1e-06, %v57_v0  ;;  %s78_s19 = sshll.u32 %s176_s0, 4  ;;  %s79_s19 = int_to_ptr.vmem [resolvable:$true] %s78_s19 }
   0xe   :  { %94 = vlog2.f32 %v59_v1 }
  0x14   :  { %v95_v2 = vpop.eup %94 }
  0x15   :  { %v61_v4 = vmul.f32 0.6931472, %v95_v2 }
  0x17   :  { %v62_v5 = vmul.f32 %v61_v4, %v58_v3 }
  0x19   :  { %72 = vst [vmem:[#allocation7] sm:$0xff] %v62_v5 }
  0x1a   :  { %83 = dma.vmem_to_hbm [thread:$0]  %s79_s19, 128, %s81_s1, [#allocation4]  }
  0x1b   :  { %172 = dma.done.wait [#allocation4], 128  }
  0x1c   :  { %173 = vsyncadd [#allocation4], 4294967168 }
  0x1d   :  { %88 = vsyncpa [#allocation3], 1 }
  0x1e   :  { %89 = vsyncpa [#allocation6], 1 }
  0x1f   :  { %90 = vsyncpa [#allocation4], 1 }

</bundles_post_ra>
